<compile_context>
chip_gen: v6e
topology: v6e:2x2x1
jax: 0.10.0
libtpu: 0.0.40
codegen_flags: <defaults>
</compile_context>

<pallas_src>
import math
import jax
import jax.numpy as jnp
from jax.experimental import pallas as pl
from jax.experimental.pallas import tpu as pltpu


# ----------------------------------------------------------------------------
# Generation-aware VMEM budgeting.
# ----------------------------------------------------------------------------
def _vmem_budget():
    """Returns (tile_byte_budget, vmem_limit_bytes) for the current TPU gen."""
    kind = ""
    try:
        kind = jax.devices()[0].device_kind.lower()
    except Exception:
        pass
    if "v7" in kind or "7x" in kind:
        # v7x: 64 MiB physical VMEM per TensorCore -> leave headroom.
        return 40 * 1024 * 1024, 52 * 1024 * 1024
    if "v6" in kind or "v5" in kind:
        # v5e / v6e: 128 MiB physical VMEM -> go well above the 32 MiB default.
        return 80 * 1024 * 1024, 100 * 1024 * 1024
    # Unknown generation: conservative defaults.
    return 24 * 1024 * 1024, 32 * 1024 * 1024


def _pick_vocab_tile(B, S, H, V, budget_bytes, out_bytes_per_elem=4):
    """Largest vocab tile whose decoder working set fits the VMEM budget.

    Accounts for: double-buffered bf16 weight tile, two double-buffered output
    tiles, resident bf16 LHS, and the bias tile.  Candidates are multiples of
    256 (matches 2x256x256 MXU on v6e/v7x and 128-lane alignment on v5e).
    """
    M = 2 * B * S
    lhs_bytes = 2 * M * H * 2                         # resident bf16 LHS (worst case)
    v_ceil = -(-V // 256) * 256
    for tn in (4096, 2048, 1024, 512, 256, 128):
        if tn > max(128, v_ceil):
            continue
        w_bytes = 2 * H * tn * 2                      # double-buffered bf16 weight
        o_bytes = 2 * 2 * B * S * tn * out_bytes_per_elem   # 2 outputs, 2 buffers
        b_bytes = 2 * tn * 4
        if lhs_bytes + w_bytes + o_bytes + b_bytes <= budget_bytes:
            return tn
    return 128


# ----------------------------------------------------------------------------
# Kernel 1: remove_sentence_boundaries for all layers.
#   out[l, b, t, :] = act[l, b, t + 1, :] if t < len_b - 2 else 0
# Grid over (layer, batch), both "parallel".  The per-batch mask is generated
# in-kernel from the SMEM-prefetched lengths (pure VPU, no HBM mask input).
# ----------------------------------------------------------------------------
def _rm_boundaries_kernel(lens_ref, act_ref, out_ref):
    b = pl.program_id(1)
    S = out_ref.shape[2]
    D = out_ref.shape[3]
    x = act_ref[0, 0, pl.ds(1, S), :]                       # (S, D): drop BOS slot
    limit = lens_ref[b] - 2                                  # valid length w/o BOS/EOS
    t = jax.lax.broadcasted_iota(jnp.int32, (S, D), 0)       # time index on sublanes
    out_ref[0, 0] = jnp.where(t < limit, x, 0.0).astype(out_ref.dtype)


def remove_sentence_boundaries_pallas(activations, lens_with_bos_eos_i32):
    """activations: [L, B, T, D]; lens: [B] int32 (incl. BOS/EOS) -> [L, B, T-2, D]."""
    L, B, T, D = activations.shape
    S = T - 2
    _, vmem_limit = _vmem_budget()
    return pl.pallas_call(
        _rm_boundaries_kernel,
        out_shape=jax.ShapeDtypeStruct((L, B, S, D), activations.dtype),
        grid_spec=pltpu.PrefetchScalarGridSpec(
            num_scalar_prefetch=1,
            grid=(L, B),
            in_specs=[pl.BlockSpec((1, 1, T, D), lambda l, b, lens: (l, b, 0, 0))],
            out_specs=pl.BlockSpec((1, 1, S, D), lambda l, b, lens: (l, b, 0, 0)),
        ),
        compiler_params=pltpu.CompilerParams(
            dimension_semantics=("parallel", "parallel"),
            vmem_limit_bytes=vmem_limit),
    )(lens_with_bos_eos_i32, activations)


# ----------------------------------------------------------------------------
# Kernel 2 (one-shot LHS prep): fold the last layer's representation into the
# decoder LHS:  (B, S, 2H) f32 (already masked)  ->  (2*B*S, H) bf16
# with forward rows first, backward rows second.  Runs once, so the decoder
# never repeats the split / cast / mask work per vocab tile.
# ----------------------------------------------------------------------------
def _fold_lhs_kernel(rep_ref, lhs_ref):
    H = lhs_ref.shape[1]
    half = lhs_ref.shape[0] // 2                      # == B*S
    x = rep_ref[0]                                    # (B, S, 2H), masked already
    xf = x[:, :, :H].reshape(half, H)                 # lane slice (H % 128 == 0): free
    xb = x[:, :, H:].reshape(half, H)
    lhs_ref[...] = jnp.concatenate([xf, xb], axis=0).astype(lhs_ref.dtype)


def fold_last_layer_lhs_pallas(representations):
    """representations: [L, B, S, 2H] f32 -> folded decoder LHS [2*B*S, H] bf16."""
    L, B, S, D = representations.shape
    H = D // 2
    M = 2 * B * S                                     # note: layout is cleanest if B*S % 8 == 0
    return pl.pallas_call(
        _fold_lhs_kernel,
        out_shape=jax.ShapeDtypeStruct((M, H), jnp.bfloat16),
        grid=(1,),
        in_specs=[pl.BlockSpec((1, B, S, D), lambda i: (L - 1, 0, 0, 0))],
        out_specs=pl.BlockSpec((M, H), lambda i: (0, 0)),
        compiler_params=pltpu.CompilerParams(dimension_semantics=("arbitrary",)),
    )(representations)


# ----------------------------------------------------------------------------
# Kernel 3: shared decoder Linear over both directions.
#   Grid over vocab tiles only; the folded bf16 LHS is index-constant, so it
#   is DMA'd once and stays resident in VMEM across the whole grid.  Per tile:
#   one MXU dot (2*B*S rows), bias add, two lane-dense stores.
# ----------------------------------------------------------------------------
def _decoder_kernel(lhs_ref, w_ref, b_ref, lf_ref, lb_ref):
    B, S, tn = lf_ref.shape
    half = lhs_ref.shape[0] // 2                      # == B*S
    out = jnp.dot(lhs_ref[...], w_ref[...],
                  preferred_element_type=jnp.float32)          # (2*B*S, tn), f32 accum
    out = out + b_ref[...]                                     # (1, tn) broadcast
    lf_ref[...] = out[:half].reshape(B, S, tn).astype(lf_ref.dtype)
    lb_ref[...] = out[half:].reshape(B, S, tn).astype(lb_ref.dtype)


def decoder_pallas(lhs_bf16, w_bf16, bias_f32, B, S, *, tn=None,
                   out_dtype=jnp.float32):
    """lhs_bf16: [2*B*S, H] bf16; w_bf16: [H, V] bf16; bias_f32: [1, V] f32
    -> (logits_forward, logits_backward), each [B, S, V] in out_dtype."""
    M, H = lhs_bf16.shape
    Hw, V = w_bf16.shape
    assert Hw == H and M == 2 * B * S
    tile_budget, vmem_limit = _vmem_budget()
    if tn is None:
        tn = _pick_vocab_tile(B, S, H, V, tile_budget,
                              out_bytes_per_elem=jnp.dtype(out_dtype).itemsize)
    n_v = pl.cdiv(V, tn)                              # ragged last tile is masked by Pallas

    return pl.pallas_call(
        _decoder_kernel,
        out_shape=(jax.ShapeDtypeStruct((B, S, V), out_dtype),
                   jax.ShapeDtypeStruct((B, S, V), out_dtype)),
        grid=(n_v,),
        in_specs=[
            # Folded LHS: constant block index -> resident in VMEM across the grid.
            pl.BlockSpec((M, H), lambda v: (0, 0)),
            # Vocab-tiled bf16 weight / f32 bias.
            pl.BlockSpec((H, tn), lambda v: (0, v)),
            pl.BlockSpec((1, tn), lambda v: (0, v)),
        ],
        out_specs=(pl.BlockSpec((B, S, tn), lambda v: (0, 0, v)),
                   pl.BlockSpec((B, S, tn), lambda v: (0, 0, v))),
        compiler_params=pltpu.CompilerParams(
            dimension_semantics=("parallel",),        # vocab tiles shard across TCs
            vmem_limit_bytes=vmem_limit),
    )(lhs_bf16, w_bf16, bias_f32)


# ----------------------------------------------------------------------------
# ELMoLM.forward equivalent
# ----------------------------------------------------------------------------
def elmo_lm_forward(bilm_activations, lens_with_bos_eos, w_dec, b_dec, *, tn=None,
                    logits_dtype=jnp.float32):
    """
    bilm_activations : [L, B, T, 2H]   (ElmoBiLm 'activations', stacked)
    lens_with_bos_eos: [B] int         (mask.sum(dim=1) incl. BOS/EOS)
    w_dec            : [H, V]          (x @ w_dec == PyTorch x @ W.T)
    b_dec            : [V]
    Returns (logits_forward, logits_backward,
             representations [L, B, T-2, 2H], mask [B, T-2] bool).
    NOTE: padded positions get logits equal to the bias (LHS rows are zeroed
    before the matmul) — same as the PyTorch module.
    """
    L, B, T, D = bilm_activations.shape
    H = D // 2
    S = T - 2
    lens_i32 = lens_with_bos_eos.astype(jnp.int32)

    # New mask without sentence boundaries (the module's returned `mask`).
    mask = jnp.arange(S, dtype=jnp.int32)[None, :] < (lens_i32 - 2)[:, None]

    representations = remove_sentence_boundaries_pallas(bilm_activations, lens_i32)
    lhs = fold_last_layer_lhs_pallas(representations)         # (2*B*S, H) bf16, once
    w_bf16 = w_dec.astype(jnp.bfloat16)                       # pre-cast: halves weight DMA
    bias = b_dec.reshape(1, -1).astype(jnp.float32)
    logits_f, logits_b = decoder_pallas(lhs, w_bf16, bias, B, S, tn=tn,
                                        out_dtype=logits_dtype)
    return logits_f, logits_b, representations, mask


if __name__ == "__main__":
    # Small but lane-aligned shapes: batch=2, seq=8 (+2 BOS/EOS -> T=10),
    # per-direction hidden H=128 (output_dim=256), vocab=512, 3 BiLM layers.
    B, SEQ, H, V, L = 2, 8, 128, 512, 3
    T = SEQ + 2
    D = 2 * H
    S = T - 2

    key = jax.random.PRNGKey(0)
    k_act, k_w, k_b = jax.random.split(key, 3)

    # Synthetic deterministic ElmoBiLm outputs (see TODO(synk) above).
    activations = jax.random.normal(k_act, (L, B, T, D), dtype=jnp.float32)
    token_lengths = jnp.array([SEQ, SEQ - 3], dtype=jnp.int32)    # lengths w/o BOS/EOS
    lens_with_bos_eos = token_lengths + 2                         # == mask.sum(dim=1)

    # Decoder Linear(H, V) params (PyTorch-style uniform init), stored as [H, V] / [V].
    bound = 1.0 / math.sqrt(H)
    w_dec = jax.random.uniform(k_w, (H, V), jnp.float32, -bound, bound)
    b_dec = jax.random.uniform(k_b, (V,), jnp.float32, -bound, bound)

    logits_f, logits_b, reps, mask = elmo_lm_forward(
        activations, lens_with_bos_eos, w_dec, b_dec)
    jax.block_until_ready((logits_f, logits_b, reps, mask))

    # Pure-JAX reference of the same semantics (bf16 matmul inputs, f32 accum,
    # like the kernel).
    keep = jnp.arange(S, dtype=jnp.int32)[None, :] < (lens_with_bos_eos - 2)[:, None]
    reps_ref = jnp.where(keep[None, :, :, None], activations[:, :, 1:T - 1, :], 0.0)
    last = reps_ref[-1]
    wb = w_dec.astype(jnp.bfloat16)
    xf = last[:, :, :H].astype(jnp.bfloat16)
    xb = last[:, :, H:].astype(jnp.bfloat16)
    lf_ref = jnp.einsum("bsh,hv->bsv", xf, wb,
                        preferred_element_type=jnp.float32) + b_dec
    lb_ref = jnp.einsum("bsh,hv->bsv", xb, wb,
                        preferred_element_type=jnp.float32) + b_dec

    assert jnp.allclose(reps, reps_ref, atol=1e-6)
    assert bool(jnp.all(mask == keep))
    assert jnp.allclose(logits_f, lf_ref, atol=2e-2, rtol=2e-2)
    assert jnp.allclose(logits_b, lb_ref, atol=2e-2, rtol=2e-2)

    print("KERNEL_OK")
</pallas_src>

<mosaic_0001>
module attributes {stable_mosaic.version = 11 : i64} {
  func.func @_rm_boundaries_kernel(%arg0: i32, %arg1: i32, %arg2: memref<2xi32, #tpu.memory_space<smem>>, %arg3: memref<1x1x10x256xf32, #tpu.memory_space<vmem>>, %arg4: memref<1x1x8x256xf32, #tpu.memory_space<vmem>>) attributes {dimension_semantics = [#tpu.dimension_semantics<parallel>, #tpu.dimension_semantics<parallel>], iteration_bounds = array<i64: 3, 2>, scalar_prefetch = 1 : i64, scratch_operands = 0 : i64, tpu.core_type = #tpu.core_type<tc>, window_params = [{transform_indices = @transform_0, window_bounds = array<i64: 1, 1, 10, 256>}, {transform_indices = @transform_1, window_bounds = array<i64: 1, 1, 8, 256>}]} {
    %c0 = arith.constant 0 : index
    %c0_0 = arith.constant 0 : index
    %c1 = arith.constant 1 : index
    %c0_1 = arith.constant 0 : index
    %0 = vector.load %arg3[%c0, %c0_0, %c1, %c0_1] : memref<1x1x10x256xf32, #tpu.memory_space<vmem>>, vector<1x1x8x256xf32>
    %1 = vector.shape_cast %0 : vector<1x1x8x256xf32> to vector<8x256xf32>
    %2 = arith.index_cast %arg1 : i32 to index
    %3 = memref.load %arg2[%2] : memref<2xi32, #tpu.memory_space<smem>>
    %c2_i32 = arith.constant 2 : i32
    %4 = arith.subi %3, %c2_i32 : i32
    %5 = tpu.iota {dimensions = array<i32: 0>} : vector<8x256xi32>
    %6 = vector.broadcast %4 : i32 to vector<8x256xi32>
    %7 = arith.cmpi slt, %5, %6 : vector<8x256xi32>
    %cst = arith.constant 0.000000e+00 : f32
    %8 = vector.broadcast %cst : f32 to vector<8x256xf32>
    %9 = arith.select %7, %1, %8 : vector<8x256xi1>, vector<8x256xf32>
    %c0_2 = arith.constant 0 : index
    %c0_3 = arith.constant 0 : index
    %c0_4 = arith.constant 0 : index
    %c0_5 = arith.constant 0 : index
    %10 = vector.load %arg4[%c0_2, %c0_3, %c0_4, %c0_5] : memref<1x1x8x256xf32, #tpu.memory_space<vmem>>, vector<1x1x8x256xf32>
    %11 = vector.shape_cast %10 : vector<1x1x8x256xf32> to vector<8x256xf32>
    %12 = vector.shape_cast %9 : vector<8x256xf32> to vector<1x1x8x256xf32>
    tpu.vector_store %arg4[%c0_2, %c0_3, %c0_4, %c0_5], %12 {strides = array<i32>} : memref<1x1x8x256xf32, #tpu.memory_space<vmem>>, vector<1x1x8x256xf32>,
    return
  }
  func.func @transform_0(%arg0: i32, %arg1: i32, %arg2: memref<2xi32, #tpu.memory_space<smem>>) -> (i32, i32, i32, i32) {
    %c0_i32 = arith.constant 0 : i32
    %c0_i32_0 = arith.constant 0 : i32
    %c0_i32_1 = arith.constant 0 : i32
    return %arg0, %arg1, %c0_i32, %c0_i32_0 : i32, i32, i32, i32
  }
  func.func @transform_1(%arg0: i32, %arg1: i32, %arg2: memref<2xi32, #tpu.memory_space<smem>>) -> (i32, i32, i32, i32) {
    %c0_i32 = arith.constant 0 : i32
    %c0_i32_0 = arith.constant 0 : i32
    %c0_i32_1 = arith.constant 0 : i32
    return %arg0, %arg1, %c0_i32, %c0_i32_0 : i32, i32, i32, i32
  }
}

</mosaic_0001>

<bundles_post_ra>
// kernel: tpu_custom_call.1
= control target key start
LH: loop header
LB: loop body
LE: loop exit
PB: predicated region body
PF: predicated region fallthrough
CT: control target
= control target key end

     0   :  { %s635_s0 = inlined_call_operand.vmem [shape: s32[2], index: 0, kind: input, shape index: {}]   ;;  %s636_s1 = inlined_call_operand.vmem [shape: f32[3,2,10,256], index: 1, kind: input, shape index: {}]   ;;  %s637_s2 = inlined_call_operand.hbm [shape: f32[3,2,8,256], index: 2, kind: output, shape index: {}]  }
   0x1   :  { %s7_s11 = sshll.u32 %s635_s0, 4  ;;  %s8_s11 = int_to_ptr.vmem [resolvable:$true] %s7_s11 }
   0x2   :  { %s364_s12 = scalar_lea.vmem %s8_s11, 16  ;;  %p369_p1 = scmp.lt.s32.totalorder %s8_s11, %s8_s11 }
   0x3   :  { %p365_p0 = scmp.ne.s32.totalorder %s8_s11, %s364_s12  ;;  %p370_p2 = scmp.lt.s32.totalorder %s364_s12, %s364_s12 }
   0x5   :  { %p371_p3 = por %p370_p2, %p369_p1 }
   0x7   :  { %p372_p4 = pnand %p371_p3, %p365_p0 }
   0x9   :  { %375 = shalt.err (!%p372_p4)  }
   0xa   :  { %s472_s13 = smov [#allocation3]  }
   0xb   :  { %10 = dma.vmem_to_smem %s8_s11, 16, %s472_s13, [#allocation2] }
   0xc   :  { %434 = dma.done.wait [#allocation2], 16 }
   0xd   :  { %435 = vsyncadd [#allocation2], 4294967280 }
   0xe   :  { %12 = sfence }
   0xf   :  { %13 = vsyncpa [#allocation5], 0 }
  0x10   :  { %15 = vsyncpa [#allocation5 + $0x1], 0  ;;  %s492_s14 = smov 0   ;;  %s494_s15 = smov 0  }
  0x11   :  { %s496_s0 = smov 0   ;;  %s498_s16 = smov 0  }
  0x12   :  { %s500_s17 = smov 0   ;;  %s502_s18 = smov 0  }
  0x13   :  { %s504_s19 = smov 0   ;;  %s506_s20 = smov 0  }
  0x14 LB: > { %s276_s21 = sadd.s32 4294967295, %s470_s20   ;;  %s277_s22 = sadd.s32 4294967294, %s470_s20   ;;  %s470_s20 = sphi %s506_s20, %s21_s20   ;;  %s466_s19 = sphi %s504_s19, %s646_s19   ;;  %s462_s18 = sphi %s502_s18, %s645_s18   ;;  %s458_s17 = sphi %s500_s17, %s644_s17   ;;  %s454_s16 = sphi %s498_s16, %s643_s16   ;;  %s450_s0 = sphi %s496_s0, %s642_s0   ;;  %s446_s15 = sphi %s494_s15, %s641_s15   ;;  %s442_s14 = sphi %s492_s14, %s640_s14  }
  0x15   : > { %s30_s23 = sadd.s32 1, %s462_s18  ;;  %s33_s24 = sadd.s32 1, %s466_s19 }
  0x16   : > { %p31_p5 = scmp.ge.s32.totalorder %s30_s23, 2  ;;  %p80_p6 = scmp.ne.s32.totalorder %s450_s0, %s446_s15 }
  0x17   : > { %p81_p7 = scmp.eq.s32.totalorder %s276_s21, 5  ;;  %p86_p10 = scmp.ne.s32.totalorder %s446_s15, %s442_s14 }
  0x18   : > { %s648_s23 = smov (%p31_p5, %s30_s23), 0  ;;  %s650_s24 = smov (!%p31_p5, %s33_s24), %s466_s19 }
  0x19   : > { %s66_s25 = ssub.s32 %s462_s18, %s648_s23  ;;  %p543_p8 = por %p81_p7, %p80_p6 }
  0x1a   : > { %p35_p9 = scmp.ge.s32.totalorder %s650_s24, 3  ;;  %p87_p11 = scmp.eq.s32.totalorder %s277_s22, 5 }
  0x1b   : > { %p280_p12 = scmp.ge.s32.totalorder %s470_s20, 1  ;;  %p117_p0 = scmp.lt.s32.totalorder %s470_s20, 7 }
  0x1c   : > { %s652_s24 = smov (%p35_p9, %s650_s24), 0  ;;  %p552_p13 = por %p87_p11, %p86_p10 }
  0x1d   : > { %s65_s28 = ssub.s32 %s466_s19, %s652_s24  ;;  %s70_s29 = sadd.s32 1, %s450_s0 }
  0x1e   : > { %s67_s30 = sor.u32 %s66_s25, %s65_s28  ;;  %p118_p1 = pnand %p280_p12, %p117_p0 }
  0x1f   : > { %p68_p2 = scmp.eq.s32.totalorder %s67_s30, 0  ;;  %s138_s4 = sand.u32 (!%p118_p1), 1, %s446_s15  }
  0x20   : > { %121 = sbr.rel (%p118_p1) target bundleno = 67 (0x43), region = 24  ;;  %p141_p3 = scmp.lt.s32.totalorder (!%p118_p1), %s458_s17, 2 }
  0x21   : > { %s561_s3 = scalar_select %p68_p2, %s450_s0, %s70_s29  }
  0x22   : > { %s281_s5 = sshll.u32 (!%p118_p1), %s138_s4, 4  ;;  %p143_p4 = scmp.lt.s32.totalorder (!%p118_p1), %s454_s16, 1 }
  0x23   : > { %s154_s6 = sld [smem:[#allocation3 + %s454_s16]] (!%p118_p1)  ;;  %s140_s12 = scalar_lea.vmem (!%p118_p1), [#allocation4], %s281_s5 }
  0x24   : > { %s194_s13 = sshll.u32 (!%p118_p1), %s140_s12, 4  ;;  %s287_s30 = sshll.u32 (!%p118_p1), %s454_s16, 1  ;;  %s577_s13 = int_to_ptr.vmem [resolvable:$true] %s194_s13 }
  0x25   : > { %s142_s7 = scalar_select %p141_p3, %s458_s17, 2  ;;  %v156_v0 = vlaneseq  ;;  %vm164_vm0 = vcmask 1046528  }
  0x26   : > { %s144_s8 = scalar_select %p143_p4, %s454_s16, 1 }
  0x27   : > { %s283_s9 = sshll.u32 %s142_s7, 3  ;;  %v157_v1 = vshrl.u32 %v156_v0, 7  ;;  %s288_s5 = sshll.u32 %s458_s17, 2 }
  0x28   : > { %s282_s10 = sshll.u32 %s144_s8, 2  ;;  %s178_s17 = scalar_lea.sflag [#allocation5], %s138_s4 }
  0x29   : > { %s147_s11 = sadd.s32 %s283_s9, %s282_s10  ;;  %s285_s22 = sadd.s32 4294967294, %s154_s6 }
  0x2a   : > { %s284_s21 = sshll.u32 %s147_s11, 3  ;;  %v158_v2 = vstv %s285_s22  ;;  %s190_s6 = sadd.s32 %s288_s5, %s287_s30 }
  0x2b   : > { %s149_s29 = scalar_lea.vmem %s636_s1, %s284_s21  ;;  %vm159_vm1 = vcmp.lt.s32.totalorder %v157_v1, %v158_v2  ;;  %s289_s7 = sshll.u32 %s190_s6, 7 }
  0x2c   : > { %v150_v3 = vld [vmem:[%s149_s29] sm:$0xfe]  ;;  %v152_v4 = vld [vmem:[%s149_s29 + $0x10] sm:$0x1]  ;;  %v151_v5 = vld [vmem:[%s149_s29 + $0x8] sm:$0xfe]  ;;  %s583_s9 = scalar_lea.hbm %s637_s2, %s289_s7 }
  0x2d   : > { %v165_v6 = vrot.slane %v150_v3, 1  ;;  %v166_v7 = vrot.slane %v152_v4, 1  ;;  %v153_v8 = vld [vmem:[%s149_s29 + $0x18] sm:$0x1]  ;;  %v168_v9 = vrot.slane %v151_v5, 1  ;;  %s376_s10 = scalar_lea.vmem %s577_s13, 256 }
  0x2e   : > { %v169_v10 = vrot.slane %v153_v8, 1  ;;  %p377_p5 = scmp.ne.s32.totalorder %s577_s13, %s376_s10  ;;  %s473_s11 = smov [#allocation4]  }
  0x2f   : > { %v167_v11 = vsel %vm164_vm0, %v165_v6, %v166_v7  ;;  %s380_s21 = sshll.u32 %s473_s11, 4  ;;  %s381_s21 = int_to_ptr.vmem [resolvable:$false] %s380_s21 }
  0x30   : > { %v173_v12 = vsel %vm159_vm1, %v167_v11, 0.0  ;;  %v170_v13 = vsel %vm164_vm0, %v168_v9, %v169_v10  ;;  %p378_p6 = pnand %p377_p5, %p543_p8  ;;  %s382_s22 = scalar_lea.vmem %s381_s21, 512 }
  0x31   : > { %175 = vst [vmem:[%s140_s12] sm:$0xff] %v173_v12  ;;  %v174_v14 = vsel %vm159_vm1, %v170_v13, 0.0  ;;  %p383_p9 = scmp.lt.s32.totalorder %s577_s13, %s381_s21  ;;  %p384_p10 = scmp.lt.s32.totalorder %s382_s22, %s376_s10 }
  0x32   : > { %176 = vst [vmem:[%s140_s12 + $0x8] sm:$0xff] %v174_v14  ;;  %p379_p7 = pneg %p378_p6 }
  0x33   : > { %p385_p11 = por %p384_p10, %p383_p9 }
  0x35   : > { %p386_p12 = pnand %p385_p11, %p379_p7 }
  0x37   : > { %389 = shalt.err (!%p386_p12)
}
  0x38   : > { %s390_s12 = scalar_lea.hbm %s583_s9, 256  ;;  %s394_s28 = scalar_lea.hbm %s637_s2, 1536 }
  0x39   : > { %p391_p0 = scmp.ne.s32.totalorder %s583_s9, %s390_s12  ;;  %p395_p3 = scmp.lt.s32.totalorder %s583_s9, %s637_s2 }
  0x3a   : > { %p396_p4 = scmp.lt.s32.totalorder %s394_s28, %s390_s12 }
  0x3b   : > { %p392_p1 = pnand %p391_p0, %p543_p8 }
  0x3c   : > { %p397_p5 = por %p396_p4, %p395_p3 }
  0x3d   : > { %p393_p2 = pneg %p392_p1 }
  0x3f   : > { %p398_p6 = pnand %p397_p5, %p393_p2 }
  0x41   : > { %401 = shalt.err (!%p398_p6)
}
  0x42   : > { %292 = dma.vmem_to_hbm [thread:$0]  (%p543_p8), %s577_s13, 256, %s583_s9, %s178_s17  }
  0x43 PF: > { %p298_p7 = scmp.ge.s32.totalorder %s470_s20, 2  ;;  %s206_s5 = sand.u32 1, %s442_s14  }
  0x44   : > { %s207_s6 = scalar_lea.sflag [#allocation5], %s206_s5 }
  0x45   : > { %p295_p9 = pnand %p298_p7, %p552_p13 }
  0x47   : > { %p296_p10 = pneg %p295_p9 }
  0x49   : > { %437 = dma.done.wait (%p296_p10), %s207_s6, 256  }
  0x4a   : > { %439 = vsyncadd (%p296_p10), %s207_s6, 4294967040  ;;  %s21_s20 = sadd.s32 1, %s470_s20   ;;  %s640_s14 = smov %s446_s15 }
  0x4b   : > { %p18_p11 = scmp.ge.s32.totalorder %s21_s20, 8   ;;  %s641_s15 = smov %s450_s0 }
  0x4c   : > { %s642_s0 = smov %s561_s3  ;;  %s643_s16 = smov %s462_s18 }
  0x4d   : > { %s644_s17 = smov %s466_s19  ;;  %s645_s18 = smov %s648_s23 }
  0x4e   : > { %s646_s19 = smov %s652_s24  ;;  %20 = sbr.rel (!%p18_p11) target bundleno = 20 (0x14), region = 59 }
  0x53   :  { %212 = vsyncpa [#allocation5], 1 }
  0x54   :  { %214 = vsyncpa [#allocation5 + $0x1], 1 }

</bundles_post_ra>
